<compile_context>
chip_gen: v7x
topology: tpu7x:2x2x1
jax: 0.10.0
libtpu: 0.0.40
codegen_flags: <defaults>
</compile_context>

<pallas_src>
import functools

import jax
import jax.numpy as jnp
import numpy as np
from jax.experimental import pallas as pl
from jax.experimental.pallas import tpu as pltpu


def _round_up(x, m):
    return ((x + m - 1) // m) * m


def _choose_tiles(M, N, itemsize, budget_bytes, chunk_bytes):
    """Static tiling decisions.

    Returns (tm, tn, cr, n_col_tiles, r_split, rows_per_split).
    """
    sub = 16 if itemsize == 2 else 8     # bf16 packs 16 rows per vreg
    lane = 128
    m_ceil = _round_up(M, sub)
    n_ceil = _round_up(N, lane)

    # Column tiles: full (lane-padded) width when <= 4096 lanes, otherwise split
    # into roughly equal lane-multiples.  Wide tiles keep each block DMA made of
    # long contiguous row segments.
    tn_cap = 4096
    n_col_tiles = pl.cdiv(n_ceil, min(n_ceil, tn_cap))
    tn = _round_up(pl.cdiv(n_ceil, n_col_tiles), lane)

    # Row tile: ~budget_bytes of input per block (the pipeline double-buffers it).
    tm = max(sub, (budget_bytes // (tn * itemsize)) // sub * sub)
    tm = min(tm, m_ceil)
    n_row_tiles = pl.cdiv(m_ceil, tm)

    # Split the row reduction across two "parallel" programs whenever it tiles
    # evenly with no fully out-of-bounds row tile: keeps both TensorCores busy on
    # v7x even with a single column tile; harmless on single-core chips.
    r_split = 1
    if n_row_tiles >= 2:
        t = _round_up(n_row_tiles, 2)
        tm_e = max(sub, _round_up(pl.cdiv(m_ceil, t), sub))
        if pl.cdiv(m_ceil, tm_e) == t:     # every row tile holds >=1 valid row
            r_split, tm, n_row_tiles = 2, tm_e, t
    rows_per_split = n_row_tiles // r_split

    # Inner chunk rows: bounds the f32 cast/square working set so a big bf16 tile
    # never needs a full-tile f32 temporary.
    cr = max(sub, (chunk_bytes // (tn * 4)) // sub * sub)
    cr = min(cr, tm)
    return tm, tn, cr, n_col_tiles, r_split, rows_per_split


def _l21_partial_kernel(s_ref, o_ref, *, tm, tn, cr, rows_per_split, n_rows,
                        mask_rows):
    """Accumulate per-column sum-of-squares into a resident (8, tn) f32 output block.

    Grid = (row_split [parallel], col_tiles [parallel], row_tiles [arbitrary, last]).
    """
    i = pl.program_id(2)                     # row-reduction step (innermost)

    @pl.when(i == 0)
    def _():
        o_ref[...] = jnp.zeros_like(o_ref)

    tile_row0 = (pl.program_id(0) * rows_per_split + i) * tm

    def accum(row0, nrows):
        s = s_ref[pl.ds(row0, nrows), :].astype(jnp.float32)
        if mask_rows:
            # Zero out-of-range rows (only traced in when the shape needs it).
            ridx = jax.lax.broadcasted_iota(jnp.int32, (nrows, tn), 0)
            ridx = ridx + (tile_row0 + row0)
            s = jnp.where(ridx < n_rows, s, 0.0)
        sq = s * s
        # Keep 8 sublanes of partial sums: pure vreg adds, no per-step XLU reduce.
        o_ref[...] += jnp.sum(sq.reshape(nrows // 8, 8, tn), axis=0)

    n_full = tm // cr
    rem = tm - n_full * cr
    if n_full == 1 and rem == 0:
        accum(0, cr)
    else:
        def body(c, carry):
            accum(pl.multiple_of(c * cr, cr), cr)
            return carry

        jax.lax.fori_loop(0, n_full, body, 0)
        if rem:
            accum(n_full * cr, rem)


def l21_norm(S, *, budget_bytes=12 * 1024 * 1024, chunk_bytes=2 * 1024 * 1024):
    """Pallas TPU implementation of L21_Norm.forward: sum_i ||S[:, i]||_2."""
    assert S.ndim == 2, "L21_Norm expects a 2-D matrix"
    M, N = S.shape
    if M == 0 or N == 0:
        return jnp.float32(0.0)

    itemsize = jnp.dtype(S.dtype).itemsize
    tm, tn, cr, n_col_tiles, r_split, rows_per_split = _choose_tiles(
        M, N, itemsize, budget_bytes, chunk_bytes)
    # Any row tile that reaches past the true row count needs in-kernel masking.
    mask_rows = (r_split * rows_per_split * tm) != M

    kernel = functools.partial(
        _l21_partial_kernel, tm=tm, tn=tn, cr=cr,
        rows_per_split=rows_per_split, n_rows=M, mask_rows=mask_rows)

    partials = pl.pallas_call(
        kernel,
        out_shape=jax.ShapeDtypeStruct((r_split * 8, n_col_tiles * tn),
                                       jnp.float32),
        grid_spec=pltpu.PrefetchScalarGridSpec(
            num_scalar_prefetch=0,
            grid=(r_split, n_col_tiles, rows_per_split),   # reduction axis last
            in_specs=[pl.BlockSpec(
                (tm, tn), lambda r, j, i: (r * rows_per_split + i, j))],
            out_specs=pl.BlockSpec((8, tn), lambda r, j, i: (r, j)),
        ),
        compiler_params=pltpu.CompilerParams(
            dimension_semantics=("parallel", "parallel", "arbitrary"),
            vmem_limit_bytes=48 * 1024 * 1024,
        ),
    )(S)

    # Tiny epilogue: combine row-split / sublane partials, sqrt per valid column,
    # then sum.  Columns >= N (lane padding) are dropped before the sqrt.
    col_sq = jnp.sum(partials, axis=0)          # (n_col_tiles * tn,)
    return jnp.sum(jnp.sqrt(col_sq[:N]))


def _ref_l21(S):
    Sf = S.astype(jnp.float32)
    return jnp.sum(jnp.sqrt(jnp.sum(Sf * Sf, axis=0)))


if __name__ == "__main__":
    key = jax.random.PRNGKey(0)
    k1, k2, k3, k4 = jax.random.split(key, 4)

    # 1) Small, non-tile-aligned f32 matrix (exercises the row-tail mask).
    S1 = jax.random.normal(k1, (57, 96), dtype=jnp.float32)
    out1 = jax.block_until_ready(l21_norm(S1))
    assert np.allclose(np.asarray(out1), np.asarray(_ref_l21(S1)),
                       rtol=1e-5, atol=1e-5), (out1, _ref_l21(S1))

    # 2) bf16 input: stays bf16 in HBM, cast to f32 inside the kernel.
    S2 = jax.random.normal(k2, (200, 320), dtype=jnp.float32).astype(jnp.bfloat16)
    out2 = jax.block_until_ready(l21_norm(S2))
    assert np.allclose(np.asarray(out2), np.asarray(_ref_l21(S2)),
                       rtol=1e-4, atol=1e-3), (out2, _ref_l21(S2))

    # 3) Tiny tile budget to exercise the multi-tile / row-split / chunk-loop /
    #    remainder-chunk / mask paths on a small matrix (grid (2, 1, 8)).
    S3 = jax.random.normal(k3, (1000, 200), dtype=jnp.float32)
    out3 = jax.block_until_ready(
        l21_norm(S3, budget_bytes=64 * 1024, chunk_bytes=24 * 1024))
    assert np.allclose(np.asarray(out3), np.asarray(_ref_l21(S3)),
                       rtol=1e-5, atol=1e-4), (out3, _ref_l21(S3))

    # 4) bf16 with an odd row-tile count (row-split falls back to 1) + mask.
    S4 = jax.random.normal(k4, (300, 200), dtype=jnp.float32).astype(jnp.bfloat16)
    out4 = jax.block_until_ready(
        l21_norm(S4, budget_bytes=32 * 1024, chunk_bytes=16 * 1024))
    assert np.allclose(np.asarray(out4), np.asarray(_ref_l21(S4)),
                       rtol=1e-4, atol=1e-3), (out4, _ref_l21(S4))

    print("KERNEL_OK")
</pallas_src>

<mosaic_0001>
module attributes {stable_mosaic.version = 11 : i64} {
  func.func @_l21_partial_kernel(%arg0: i32, %arg1: i32, %arg2: i32, %arg3: memref<64x128xf32, #tpu.memory_space<vmem>>, %arg4: memref<8x128xf32, #tpu.memory_space<vmem>>) attributes {dimension_semantics = [#tpu.dimension_semantics<parallel>, #tpu.dimension_semantics<parallel>, #tpu.dimension_semantics<arbitrary>], iteration_bounds = array<i64: 1, 1, 1>, scalar_prefetch = 0 : i64, scratch_operands = 0 : i64, tpu.core_type = #tpu.core_type<tc>, window_params = [{transform_indices = @transform_0, window_bounds = array<i64: 64, 128>}, {transform_indices = @transform_1, window_bounds = array<i64: 8, 128>}]} {
    %c0_i32 = arith.constant 0 : i32
    %0 = arith.cmpi eq, %arg2, %c0_i32 : i32
    %1 = arith.extui %0 : i1 to i32
    %c0_i32_0 = arith.constant 0 : i32
    %2 = arith.cmpi ne, %1, %c0_i32_0 : i32
    scf.if %2 {
      %cst_8 = arith.constant 0.000000e+00 : f32
      %21 = vector.broadcast %cst_8 : f32 to vector<8x128xf32>
      %c0_9 = arith.constant 0 : index
      %c0_10 = arith.constant 0 : index
      %22 = vector.load %arg4[%c0_9, %c0_10] : memref<8x128xf32, #tpu.memory_space<vmem>>, vector<8x128xf32>
      tpu.vector_store %arg4[%c0_9, %c0_10], %21 {strides = array<i32>} : memref<8x128xf32, #tpu.memory_space<vmem>>, vector<8x128xf32>,
    } else {
    }
    %c1_i32 = arith.constant 1 : i32
    %3 = arith.muli %arg0, %c1_i32 : i32
    %4 = arith.addi %3, %arg2 : i32
    %c64_i32 = arith.constant 64 : i32
    %5 = arith.muli %4, %c64_i32 : i32
    %c0 = arith.constant 0 : index
    %c0_1 = arith.constant 0 : index
    %6 = vector.load %arg3[%c0, %c0_1] : memref<64x128xf32, #tpu.memory_space<vmem>>, vector<64x128xf32>
    %7 = tpu.iota {dimensions = array<i32: 0>} : vector<64x128xi32>
    %c0_i32_2 = arith.constant 0 : i32
    %8 = arith.addi %5, %c0_i32_2 : i32
    %9 = vector.broadcast %8 : i32 to vector<64x128xi32>
    %10 = arith.addi %7, %9 : vector<64x128xi32>
    %c57_i32 = arith.constant 57 : i32
    %11 = vector.broadcast %c57_i32 : i32 to vector<64x128xi32>
    %12 = arith.cmpi slt, %10, %11 : vector<64x128xi32>
    %cst = arith.constant 0.000000e+00 : f32
    %13 = vector.broadcast %cst : f32 to vector<64x128xf32>
    %14 = arith.select %12, %6, %13 : vector<64x128xi1>, vector<64x128xf32>
    %15 = arith.mulf %14, %14 : vector<64x128xf32>
    %c0_3 = arith.constant 0 : index
    %c0_4 = arith.constant 0 : index
    %16 = vector.load %arg4[%c0_3, %c0_4] : memref<8x128xf32, #tpu.memory_space<vmem>>, vector<8x128xf32>
    %17 = vector.shape_cast %15 : vector<64x128xf32> to vector<8x8x128xf32>
    %cst_5 = arith.constant dense<0.000000e+00> : vector<8x128xf32>
    %18 = vector.multi_reduction <add>, %17, %cst_5 [0] : vector<8x8x128xf32> to vector<8x128xf32>
    %19 = arith.addf %16, %18 : vector<8x128xf32>
    %c0_6 = arith.constant 0 : index
    %c0_7 = arith.constant 0 : index
    %20 = vector.load %arg4[%c0_6, %c0_7] : memref<8x128xf32, #tpu.memory_space<vmem>>, vector<8x128xf32>
    tpu.vector_store %arg4[%c0_6, %c0_7], %19 {strides = array<i32>} : memref<8x128xf32, #tpu.memory_space<vmem>>, vector<8x128xf32>,
    return
  }
  func.func @transform_0(%arg0: i32, %arg1: i32, %arg2: i32) -> (i32, i32) {
    %c1_i32 = arith.constant 1 : i32
    %0 = arith.muli %arg0, %c1_i32 : i32
    %1 = arith.addi %0, %arg2 : i32
    %c0_i32 = arith.constant 0 : i32
    return %1, %arg1 : i32, i32
  }
  func.func @transform_1(%arg0: i32, %arg1: i32, %arg2: i32) -> (i32, i32) {
    %c0_i32 = arith.constant 0 : i32
    return %arg0, %arg1 : i32, i32
  }
}

</mosaic_0001>

<bundles_post_ra>
// kernel: tpu_custom_call.1
= control target key start
LH: loop header
LB: loop body
LE: loop exit
PB: predicated region body
PF: predicated region fallthrough
CT: control target
= control target key end

     0   :  { %6 = vsyncpa [#allocation3], 0  ;;  %s202_s0 = inlined_call_operand.hbm [shape: f32[57,96], index: 0, kind: input, shape index: {}]   ;;  %s203_s1 = inlined_call_operand.hbm [shape: f32[8,128], index: 1, kind: output, shape index: {}]  }
   0x1   :  { %7 = vsyncpa [#allocation4], 0  ;;  %s164_s6 = smov [#allocation2]   ;;  %s116_s10 = scalar_lea.hbm %s202_s0, 1024 }
   0x2   :  { %s17_s7 = sshll.u32 %s164_s6, 4  ;;  %p117_p0 = scmp.ne.s32.totalorder %s202_s0, %s116_s10  ;;  %s18_s7 = int_to_ptr.vmem [resolvable:$true] %s17_s7 }
   0x3   :  { %p120_p1 = scmp.lt.u32.totalorder %s116_s10, %s202_s0 }
   0x5   :  { %p122_p2 = pnand %p120_p1, %p117_p0 }
   0x7   :  { %125 = shalt.err (!%p122_p2)
}
   0x8   :  { %s126_s15 = scalar_lea.vmem %s18_s7, 1024  ;;  %p131_p4 = scmp.lt.s32.totalorder %s18_s7, %s18_s7 }
   0x9   :  { %p127_p3 = scmp.ne.s32.totalorder %s18_s7, %s126_s15  ;;  %p132_p5 = scmp.lt.s32.totalorder %s126_s15, %s126_s15 }
   0xb   :  { %p133_p6 = por %p132_p5, %p131_p4 }
   0xd   :  { %p134_p7 = pnand %p133_p6, %p127_p3 }
   0xf   :  { %137 = shalt.err (!%p134_p7)
}
  0x10   :  { %s165_s16 = smov 128   ;;  %s166_s17 = smov 8  }
  0x11   :  { %23 = dma.hbm_to_vmem [thread:$0]  %s202_s0, 1024, %s18_s7, [#allocation3], %s165_s16, %s165_s16, %s166_s17  }
  0x12   :  { %160 = dma.done.wait [#allocation3], 1024  }
  0x13   :  { %161 = vsyncadd [#allocation3], 4294966272  ;;  %v44_v0 = vlaneseq  ;;  %v36_v2 = vld [vmem:[#allocation2] sm:$0xff]  ;;  %v37_v3 = vld [vmem:[#allocation2 + $0x8] sm:$0xff]  ;;  %s167_s0 = smov [#allocation5]  }
  0x14   :  { %v38_v4 = vld [vmem:[#allocation2 + $0x10] sm:$0xff]  ;;  %v39_v5 = vld [vmem:[#allocation2 + $0x18] sm:$0xff]  ;;  %v78_v7 = vmul.f32 %v36_v2, %v36_v2  ;;  %v79_v8 = vmul.f32 %v37_v3, %v37_v3  ;;  %v40_v10 = vld [vmem:[#allocation2 + $0x20] sm:$0xff]  ;;  %s102_s20 = sshll.u32 %s167_s0, 4  ;;  %s103_s20 = int_to_ptr.vmem [resolvable:$true] %s102_s20 }
  0x15   :  { %v45_v1 = vshrl.u32 %v44_v0, 7  ;;  %v80_v9 = vmul.f32 %v38_v4, %v38_v4  ;;  %v81_v11 = vmul.f32 %v39_v5, %v39_v5  ;;  %v41_v13 = vld [vmem:[#allocation2 + $0x28] sm:$0xff]  ;;  %v43_v14 = vld [vmem:[#allocation2 + $0x38] sm:$0xff]  ;;  %v82_v15 = vmul.f32 %v40_v10, %v40_v10  ;;  %v42_v17 = vld [vmem:[#allocation2 + $0x30] sm:$0xff]  ;;  %s138_s21 = scalar_lea.vmem %s103_s20, 128  ;;  %p143_p9 = scmp.lt.s32.totalorder %s103_s20, %s103_s20 }
  0x16   :  { %v87_v12 = vadd.f32 %v79_v8, %v78_v7  ;;  %v83_v18 = vmul.f32 %v41_v13, %v41_v13  ;;  %v84_v21 = vmul.f32 %v42_v17, %v42_v17  ;;  %p139_p8 = scmp.ne.s32.totalorder %s103_s20, %s138_s21  ;;  %p144_p10 = scmp.lt.s32.totalorder %s138_s21, %s138_s21 }
  0x17   :  { %v52_v6 = vadd.s32 56, %v45_v1 }
  0x18   :  { %v88_v16 = vadd.f32 %v87_v12, %v80_v9  ;;  %p145_p11 = por %p144_p10, %p143_p9 }
  0x19   :  { %vm69_vm0 = vcmp.lt.s32.totalorder %v52_v6, 57 }
  0x1a   :  { %v89_v19 = vadd.f32 %v88_v16, %v81_v11  ;;  %v77_v20 = vsel %vm69_vm0, %v43_v14, 0.0  ;;  %p146_p12 = pnand %p145_p11, %p139_p8 }
  0x1b   :  { %v85_v23 = vmul.f32 %v77_v20, %v77_v20 }
  0x1c   :  { %v90_v22 = vadd.f32 %v89_v19, %v82_v15 }
  0x1e   :  { %v91_v24 = vadd.f32 %v90_v22, %v83_v18 }
  0x20   :  { %v92_v25 = vadd.f32 %v91_v24, %v84_v21 }
  0x22   :  { %v93_v26 = vadd.f32 %v92_v25, %v85_v23 }
  0x24   :  { %95 = vst [vmem:[#allocation5] sm:$0xff] %v93_v26 }
  0x25   :  { %149 = shalt.err (!%p146_p12)
}
  0x26   :  { %s150_s24 = scalar_lea.hbm %s203_s1, 128 }
  0x27   :  { %p151_p13 = scmp.ne.s32.totalorder %s203_s1, %s150_s24  ;;  %p154_p0 = scmp.lt.u32.totalorder %s150_s24, %s203_s1 }
  0x29   :  { %p156_p1 = pnand %p154_p0, %p151_p13 }
  0x2b   :  { %159 = shalt.err (!%p156_p1)
}
  0x2c   :  { %105 = dma.vmem_to_hbm [thread:$0]  %s103_s20, 128, %s203_s1, [#allocation4]  }
  0x2d   :  { %162 = dma.done.wait [#allocation4], 128  }
  0x2e   :  { %163 = vsyncadd [#allocation4], 4294967168 }
  0x2f   :  { %109 = vsyncpa [#allocation3], 1 }
  0x30   :  { %110 = vsyncpa [#allocation4], 1 }

</bundles_post_ra>
